<compile_context>
chip_gen: v7x
topology: tpu7x:2x2x1
jax: 0.10.0
libtpu: 0.0.40
codegen_flags: <defaults>
</compile_context>

<pallas_src>
import functools
import math

import jax
import jax.numpy as jnp
from jax.experimental import pallas as pl
from jax.experimental.pallas import tpu as pltpu


def _round_up(v, m):
    return ((v + m - 1) // m) * m


# --------------------------------------------------------------------------
# Kernels: x_ref is (tb, F*D) lane-flattened; reduce over F via static lane
# slices (free views when D is lane-aligned), accumulate in f32.
# --------------------------------------------------------------------------
def _gated_agg_kernel(x_ref, w_ref, o_ref, *, F, D):
    # x_ref: (tb, F*D), w_ref: (1, F*D), o_ref: (tb, D)
    x = x_ref[...]
    w = w_ref[...]
    acc = (x[:, 0:D] * w[:, 0:D]).astype(jnp.float32)
    for f in range(1, F):
        lo = f * D
        acc = acc + (x[:, lo:lo + D] * w[:, lo:lo + D]).astype(jnp.float32)
    o_ref[...] = acc.astype(o_ref.dtype)


def _sum_agg_kernel(x_ref, o_ref, *, F, D):
    # x_ref: (tb, F*D), o_ref: (tb, D)
    x = x_ref[...]
    acc = x[:, 0:D].astype(jnp.float32)
    for f in range(1, F):
        lo = f * D
        acc = acc + x[:, lo:lo + D].astype(jnp.float32)
    o_ref[...] = acc.astype(o_ref.dtype)


# --------------------------------------------------------------------------
# VMEM / tile sizing
# --------------------------------------------------------------------------
def _vmem_params():
    """Per-generation VMEM budgets (conservative fallback = v7x, 64 MiB/TC)."""
    cap = 64 * 1024 * 1024
    try:
        info = pltpu.get_tpu_info()
        cap = int(getattr(info, "vmem_capacity_bytes", cap))
    except Exception:
        pass
    if cap >= 128 * 1024 * 1024:          # v5e / v6e: 128 MiB VMEM
        return dict(max_tokens=4096,
                    vmem_block_budget=44 * 1024 * 1024,
                    vmem_limit_bytes=100 * 1024 * 1024)
    else:                                  # v7x: 64 MiB VMEM per TC
        return dict(max_tokens=2048,
                    vmem_block_budget=22 * 1024 * 1024,
                    vmem_limit_bytes=48 * 1024 * 1024)


def _choose_block_tokens(T, FD, D, itemsize, *, max_tokens, vmem_block_budget):
    """Largest token tile (multiple of 8, <= max_tokens) whose double-buffered
    footprint for the flattened (tb, F*D) layout stays under the budget."""
    fd_lanes = _round_up(max(FD, 1), 128)     # lane padding of the x block
    d_lanes = _round_up(max(D, 1), 128)       # lane padding of the out block
    per_tok = (2 * fd_lanes * itemsize        # x block, double buffered
               + 2 * d_lanes * itemsize       # out block, double buffered
               + 4 * d_lanes)                 # f32 accumulator
    tb = vmem_block_budget // per_tok
    tb = min(tb, max_tokens, _round_up(T, 8))
    tb = max(8, (tb // 8) * 8)
    # Guarantee >= 2 grid steps when possible so the "parallel" token axis
    # actually shards across both TensorCores on v7x.
    if T >= 16 and pl.cdiv(T, tb) < 2:
        tb = max(8, _round_up(pl.cdiv(T, 2), 8))
    return int(tb)


# --------------------------------------------------------------------------
# Public wrapper
# --------------------------------------------------------------------------
def stacked_feat_aggregation(x, weight=None, *, agg_method="gated",
                             block_tokens=None):
    """x: (N, S, F, D); weight: (F, D) if agg_method == 'gated'. Returns (N, S, D)."""
    N, S, F, D = x.shape
    T = N * S
    FD = F * D
    x_flat = x.reshape(T, FD)                 # contiguous -> free reshape

    itemsize = jnp.dtype(x.dtype).itemsize
    vp = _vmem_params()
    if block_tokens is None:
        tb = _choose_block_tokens(T, FD, D, itemsize,
                                  max_tokens=vp["max_tokens"],
                                  vmem_block_budget=vp["vmem_block_budget"])
    else:
        tb = max(8, (min(int(block_tokens), _round_up(T, 8)) // 8) * 8)
    grid = (pl.cdiv(T, tb),)                  # ragged last block handled by Pallas

    out_shape = jax.ShapeDtypeStruct((T, D), x.dtype)
    x_spec = pl.BlockSpec((tb, FD), lambda i: (i, 0))
    out_spec = pl.BlockSpec((tb, D), lambda i: (i, 0))

    compiler_params = pltpu.CompilerParams(
        dimension_semantics=("parallel",),
        vmem_limit_bytes=vp["vmem_limit_bytes"],
    )

    if agg_method == "gated":
        assert weight is not None and weight.shape == (F, D)
        # One-time wrapper cast: avoid silent f32 promotion of the whole
        # product inside the kernel when x is bf16.
        w_flat = weight.astype(x.dtype).reshape(1, FD)
        cost = pl.CostEstimate(
            flops=2 * T * F * D,
            transcendentals=0,
            bytes_accessed=(T * FD + FD + T * D) * itemsize,
        )
        w_spec = pl.BlockSpec((1, FD), lambda i: (0, 0))   # stays resident
        kernel = functools.partial(_gated_agg_kernel, F=F, D=D)
        out_flat = pl.pallas_call(
            kernel,
            out_shape=out_shape,
            grid_spec=pltpu.PrefetchScalarGridSpec(
                num_scalar_prefetch=0,
                grid=grid,
                in_specs=[x_spec, w_spec],
                out_specs=out_spec,
            ),
            compiler_params=compiler_params,
            cost_estimate=cost,
        )(x_flat, w_flat)
    else:
        cost = pl.CostEstimate(
            flops=T * F * D,
            transcendentals=0,
            bytes_accessed=(T * FD + T * D) * itemsize,
        )
        kernel = functools.partial(_sum_agg_kernel, F=F, D=D)
        out_flat = pl.pallas_call(
            kernel,
            out_shape=out_shape,
            grid_spec=pltpu.PrefetchScalarGridSpec(
                num_scalar_prefetch=0,
                grid=grid,
                in_specs=[x_spec],
                out_specs=out_spec,
            ),
            compiler_params=compiler_params,
            cost_estimate=cost,
        )(x_flat)

    return out_flat.reshape(N, S, D)


def init_gated_weight(key, stacked_feat, hidden_size, dtype=jnp.float32):
    """nn.init.kaiming_uniform_(w, a=sqrt(5)) on a (F, D) tensor: fan_in = D,
    gain = sqrt(2/(1+5)) = sqrt(1/3), bound = gain*sqrt(3/fan_in) = 1/sqrt(D)."""
    bound = 1.0 / math.sqrt(hidden_size)
    return jax.random.uniform(
        key, (stacked_feat, hidden_size), dtype=dtype, minval=-bound, maxval=bound
    )


if __name__ == "__main__":
    # small shapes consistent with the module: batch N=2, seq S=8,
    # stacked_feat F=4, hidden_size D=32
    N, S, F, D = 2, 8, 4, 32
    key = jax.random.PRNGKey(0)
    kx, kw = jax.random.split(key)

    x = jax.random.normal(kx, (N, S, F, D), dtype=jnp.float32)
    weight = init_gated_weight(kw, F, D)

    # gated path (kernel)
    out_gated = stacked_feat_aggregation(x, weight, agg_method="gated")
    out_gated = jax.block_until_ready(out_gated)
    ref_gated = jnp.einsum("nsfd,fd->nsd", x, weight)
    assert out_gated.shape == (N, S, D)
    assert jnp.allclose(out_gated, ref_gated, atol=1e-5, rtol=1e-5)

    # sum path (kernel)
    out_sum = stacked_feat_aggregation(x, agg_method="sum")
    out_sum = jax.block_until_ready(out_sum)
    ref_sum = jnp.sum(x, axis=-2)
    assert out_sum.shape == (N, S, D)
    assert jnp.allclose(out_sum, ref_sum, atol=1e-5, rtol=1e-5)

    print("KERNEL_OK")
</pallas_src>

<mosaic_0001>
module attributes {stable_mosaic.version = 11 : i64} {
  func.func @_gated_agg_kernel(%arg0: i32, %arg1: memref<8x128xf32, #tpu.memory_space<vmem>>, %arg2: memref<1x128xf32, #tpu.memory_space<vmem>>, %arg3: memref<8x32xf32, #tpu.memory_space<vmem>>) attributes {dimension_semantics = [#tpu.dimension_semantics<parallel>], iteration_bounds = array<i64: 2>, scalar_prefetch = 0 : i64, scratch_operands = 0 : i64, tpu.core_type = #tpu.core_type<tc>, window_params = [{transform_indices = @transform_0, window_bounds = array<i64: 8, 128>}, {pipeline_mode = #tpu.pipeline_mode<synchronous>, transform_indices = @transform_1, window_bounds = array<i64: 1, 128>}, {transform_indices = @transform_2, window_bounds = array<i64: 8, 32>}]} {
    %c0 = arith.constant 0 : index
    %c0_0 = arith.constant 0 : index
    %0 = vector.load %arg1[%c0, %c0_0] : memref<8x128xf32, #tpu.memory_space<vmem>>, vector<8x128xf32>
    %c0_1 = arith.constant 0 : index
    %c0_2 = arith.constant 0 : index
    %1 = vector.load %arg2[%c0_1, %c0_2] : memref<1x128xf32, #tpu.memory_space<vmem>>, vector<1x128xf32>
    %2 = vector.extract_strided_slice %0 {offsets = [0, 0], sizes = [8, 32], strides = [1, 1]} : vector<8x128xf32> to vector<8x32xf32>
    %3 = vector.extract_strided_slice %1 {offsets = [0, 0], sizes = [1, 32], strides = [1, 1]} : vector<1x128xf32> to vector<1x32xf32>
    %4 = vector.broadcast %3 : vector<1x32xf32> to vector<8x32xf32>
    %5 = arith.mulf %2, %4 : vector<8x32xf32>
    %6 = vector.extract_strided_slice %0 {offsets = [0, 32], sizes = [8, 32], strides = [1, 1]} : vector<8x128xf32> to vector<8x32xf32>
    %7 = vector.extract_strided_slice %1 {offsets = [0, 32], sizes = [1, 32], strides = [1, 1]} : vector<1x128xf32> to vector<1x32xf32>
    %8 = vector.broadcast %7 : vector<1x32xf32> to vector<8x32xf32>
    %9 = arith.mulf %6, %8 : vector<8x32xf32>
    %10 = arith.addf %5, %9 : vector<8x32xf32>
    %11 = vector.extract_strided_slice %0 {offsets = [0, 64], sizes = [8, 32], strides = [1, 1]} : vector<8x128xf32> to vector<8x32xf32>
    %12 = vector.extract_strided_slice %1 {offsets = [0, 64], sizes = [1, 32], strides = [1, 1]} : vector<1x128xf32> to vector<1x32xf32>
    %13 = vector.broadcast %12 : vector<1x32xf32> to vector<8x32xf32>
    %14 = arith.mulf %11, %13 : vector<8x32xf32>
    %15 = arith.addf %10, %14 : vector<8x32xf32>
    %16 = vector.extract_strided_slice %0 {offsets = [0, 96], sizes = [8, 32], strides = [1, 1]} : vector<8x128xf32> to vector<8x32xf32>
    %17 = vector.extract_strided_slice %1 {offsets = [0, 96], sizes = [1, 32], strides = [1, 1]} : vector<1x128xf32> to vector<1x32xf32>
    %18 = vector.broadcast %17 : vector<1x32xf32> to vector<8x32xf32>
    %19 = arith.mulf %16, %18 : vector<8x32xf32>
    %20 = arith.addf %15, %19 : vector<8x32xf32>
    %c0_3 = arith.constant 0 : index
    %c0_4 = arith.constant 0 : index
    %21 = vector.load %arg3[%c0_3, %c0_4] : memref<8x32xf32, #tpu.memory_space<vmem>>, vector<8x32xf32>
    tpu.vector_store %arg3[%c0_3, %c0_4], %20 {strides = array<i32>} : memref<8x32xf32, #tpu.memory_space<vmem>>, vector<8x32xf32>,
    return
  }
  func.func @transform_0(%arg0: i32) -> (i32, i32) {
    %c0_i32 = arith.constant 0 : i32
    %c0_i32_0 = arith.constant 0 : i32
    return %arg0, %c0_i32 : i32, i32
  }
  func.func @transform_1(%arg0: i32) -> (i32, i32) {
    %c0_i32 = arith.constant 0 : i32
    %c0_i32_0 = arith.constant 0 : i32
    %c0_i32_1 = arith.constant 0 : i32
    return %c0_i32, %c0_i32_0 : i32, i32
  }
  func.func @transform_2(%arg0: i32) -> (i32, i32) {
    %c0_i32 = arith.constant 0 : i32
    %c0_i32_0 = arith.constant 0 : i32
    return %arg0, %c0_i32 : i32, i32
  }
}

</mosaic_0001>

<bundles_post_ra>
// kernel: tpu_custom_call.1
= control target key start
LH: loop header
LB: loop body
LE: loop exit
PB: predicated region body
PF: predicated region fallthrough
CT: control target
= control target key end

     0   :  { %7 = vsyncpa [#allocation3], 0  ;;  %s611_s0 = inlined_call_operand.hbm [shape: f32[16,128], index: 0, kind: input, shape index: {}]   ;;  %s612_s1 = inlined_call_operand.vmem [shape: f32[1,128], index: 1, kind: input, shape index: {}]   ;;  %s613_s2 = inlined_call_operand.hbm [shape: f32[16,32], index: 2, kind: output, shape index: {}]  }
   0x1   :  { %9 = vsyncpa [#allocation3 + $0x1], 0 }
   0x2   :  { %10 = vsyncpa [#allocation4], 0 }
   0x3   :  { %12 = vsyncpa [#allocation4 + $0x1], 0  ;;  %s447_s9 = smov 0   ;;  %s449_s10 = smov 0  }
   0x4   :  { %s451_s11 = smov 0   ;;  %s453_s12 = smov 0  }
   0x5 LB: > { %s468_s13 = sadd.s32 4294967295, %s425_s12   ;;  %s267_s14 = sadd.s32 4294967294, %s425_s12   ;;  %s425_s12 = sphi %s453_s12, %s628_s12   ;;  %s421_s11 = sphi %s451_s11, %s627_s11   ;;  %s417_s10 = sphi %s449_s10, %s626_s10   ;;  %s413_s9 = sphi %s447_s9, %s625_s9  }
   0x6   : > { %s472_s15 = sadd.s32 1, %s425_s12   ;;  %s25_s16 = sadd.s32 1, %s421_s11 }
   0x7   : > { %s22_s17 = ssub.s32 %s425_s12, %s472_s15  ;;  %p32_p0 = scmp.ne.s32.totalorder %s421_s11, %s417_s10 }
   0x8   : > { %p23_p1 = scmp.eq.s32.totalorder %s22_s17, 0  ;;  %p33_p2 = scmp.eq.s32.totalorder %s425_s12, 0 }
   0x9   : > { %p38_p3 = scmp.ne.s32.totalorder %s417_s10, %s413_s9  ;;  %p39_p4 = scmp.eq.s32.totalorder %s468_s13, 0 }
   0xa   : > { %s484_s18 = scalar_select %p23_p1, %s421_s11, %s25_s16  }
   0xb   : > { %p486_p5 = por %p33_p2, %p32_p0  ;;  %p490_p6 = por %p39_p4, %p38_p3 }
   0xc   : > { %p83_p7 = scmp.eq.s32.totalorder %s468_s13, 1  ;;  %p89_p8 = scmp.eq.s32.totalorder %s267_s14, 1 }
   0xd   : > { %p292_p10 = scmp.lt.s32.totalorder %s425_s12, 2  ;;  %s112_s23 = sand.u32 1, %s421_s11  }
   0xe   : > { %p497_p11 = por %p83_p7, %p32_p0  ;;  %p501_p12 = por %p89_p8, %p38_p3 }
   0xf   : > { %s271_s24 = sshll.u32 %s425_s12, 7  ;;  %s270_s25 = sshll.u32 %s112_s23, 3 }
  0x10   : > { %s617_s21 = scalar_select %p497_p11, 1, 0 }
  0x11   : > { %s618_s22 = scalar_select %p501_p12, 1, 0 }
  0x12   : > { %s510_s28 = scalar_lea.hbm %s611_s0, %s271_s24  ;;  %s116_s29 = scalar_lea.vmem [#allocation2], %s270_s25 }
  0x13   : > { %s123_s30 = sshll.u32 %s116_s29, 4  ;;  %p514_p13 = pnand %p292_p10, %p486_p5  ;;  %s518_s30 = int_to_ptr.vmem [resolvable:$true] %s123_s30 }
  0x14   : > { %s113_s4 = scalar_lea.sflag [#allocation3], %s112_s23  ;;  %s329_s5 = scalar_lea.hbm %s510_s28, 128 }
  0x15   : > { %p330_p2 = scmp.ne.s32.totalorder %s510_s28, %s329_s5  ;;  %p331_p3 = pneg %p514_p13 }
  0x16   : > { %s334_s8 = scalar_lea.hbm %s611_s0, 256  ;;  %p335_p5 = scmp.lt.u32.totalorder %s510_s28, %s611_s0 }
  0x17   : > { %p332_p4 = pnand %p331_p3, %p330_p2  ;;  %p336_p8 = scmp.lt.u32.totalorder %s334_s8, %s329_s5 }
  0x18   : > { %p338_p9 = scmp.lt.u32.totalorder %s329_s5, %s510_s28 }
  0x19   : > { %p333_p7 = pneg %p332_p4  ;;  %p337_p10 = por %p336_p8, %p335_p5 }
  0x1b   : > { %p339_p0 = por %p338_p9, %p337_p10 }
  0x1d   : > { %p340_p1 = pnand %p339_p0, %p333_p7 }
  0x1f   : > { %343 = shalt.err (!%p340_p1)
}
  0x20   : > { %s344_s17 = scalar_lea.vmem %s518_s30, 128  ;;  %s427_s19 = smov [#allocation2]  }
  0x21   : > { %p345_p2 = scmp.ne.s32.totalorder %s518_s30, %s344_s17  ;;  %s349_s23 = sshll.u32 %s427_s19, 4  ;;  %s350_s23 = int_to_ptr.vmem [resolvable:$false] %s349_s23 }
  0x22   : > { %s351_s24 = scalar_lea.vmem %s350_s23, 256  ;;  %p352_p11 = scmp.lt.s32.totalorder %s518_s30, %s350_s23 }
  0x23   : > { %p347_p4 = pnand %p345_p2, %p331_p3  ;;  %p353_p5 = scmp.lt.s32.totalorder %s351_s24, %s344_s17 }
  0x25   : > { %p348_p12 = pneg %p347_p4  ;;  %p354_p8 = por %p353_p5, %p352_p11 }
  0x27   : > { %p355_p9 = pnand %p354_p8, %p348_p12 }
  0x29   : > { %358 = shalt.err (!%p355_p9)
}
  0x2a   : > { %287 = dma.hbm_to_vmem [thread:$0]  (!%p514_p13), %s510_s28, 128, %s518_s30, %s113_s4  }
  0x2b   : > { %p620_p0 = scmp.lt.s32.totalorder %s425_s12, 3  ;;  %p621_p1 = scmp.ge.s32.totalorder %s425_s12, 1 }
  0x2d   : > { %p129_p3 = pnand %p621_p1, %p620_p0 }
  0x2e   : > { %s552_s25 = sand.u32 (!%p129_p3), 1, %s417_s10  }
  0x2f   : > { %132 = sbr.rel (%p129_p3) target bundleno = 196 (0xc4), region = 28  ;;  %s273_s26 = sshll.u32 (!%p129_p3), %s552_s25, 3 }
  0x30   : > { %s135_s27 = scalar_lea.sflag (!%p129_p3), [#allocation3], %s552_s25  ;;  %s138_s29 = scalar_lea.vmem (!%p129_p3), [#allocation2], %s273_s26 }
  0x36   : > { %404 = dma.done.wait (%p490_p6), %s135_s27, 128  }
  0x37   : > { %406 = vsyncadd (%p490_p6), %s135_s27, 4294967168  ;;  %v159_v0 = vld [vmem:[%s138_s29] sm:$0xff]  ;;  %s428_s3 = smov 96   ;;  %s429_s4 = smov 32   ;;  %vm181_vm0 = vcmask 261120  }
  0x38   : > { %v275_v1 = vld [vmem:[%s612_s1] ss:$0 sm:$0xff]  ;;  %s430_s5 = smov 64   ;;  %s277_s20 = sshll.u32 %s468_s13, 7 }
  0x39   : > { %v167_v2 = vmul.f32 %v275_v1, %v159_v0  ;;  %s158_s6 = scalar_lea.vmem [#allocation5], %s273_s26  ;;  %s567_s16 = scalar_lea.hbm %s613_s2, %s277_s20 }
  0x3a   : > { %s197_s7 = sshll.u32 %s158_s6, 4  ;;  %s184_s17 = scalar_lea.sflag [#allocation4], %s552_s25  ;;  %s569_s7 = int_to_ptr.vmem [resolvable:$true] %s197_s7 }
  0x3b   : > { %169 = vrot.lane.b32.xlu0 %v167_v2, %s428_s3  ;;  %177 = vrot.lane.b32.xlu1 %v167_v2, %s429_s4  ;;  %s359_s19 = scalar_lea.vmem %s569_s7, 128  ;;  %p622_p11 = scmp.ne.s32.totalorder %s617_s21, 0 }
  0x3c   : > { %p360_p6 = scmp.ne.s32.totalorder %s569_s7, %s359_s19  ;;  %s431_s13 = smov [#allocation5]  }
  0x3d   : > { %s363_s23 = sshll.u32 %s431_s13, 4  ;;  %s364_s23 = int_to_ptr.vmem [resolvable:$false] %s363_s23 }
  0x3e   : > { %p361_p12 = pnand %p360_p6, %p622_p11  ;;  %s365_s24 = scalar_lea.vmem %s364_s23, 256 }
  0x3f   : > { %173 = vrot.lane.b32.xlu0 %v167_v2, %s430_s5  ;;  %p366_p7 = scmp.lt.s32.totalorder %s569_s7, %s364_s23  ;;  %p367_p10 = scmp.lt.s32.totalorder %s365_s24, %s359_s19 }
  0x40   : > { %p362_p13 = pneg %p361_p12 }
  0x41   : > { %p368_p2 = por %p367_p10, %p366_p7 }
  0x43   : > { %p369_p4 = pnand %p368_p2, %p362_p13 }
  0xad   : > { %v170_v3 = vpop.permute.xlu0 %169  ;;  %v178_v6 = vpop.permute.xlu1 %177 }
  0xae   : > { %v172_v4 = vadd.f32 %v170_v3, %v167_v2 }
  0xb1   : > { %v174_v5 = vpop.permute.xlu0 %173 }
  0xb2   : > { %v176_v7 = vadd.f32 %v174_v5, %v172_v4 }
  0xb4   : > { %v180_v8 = vadd.f32 %v178_v6, %v176_v7 }
  0xb6   : > { %182 = vst.msk [vmem:[%s158_s6] sm:$0xff] %vm181_vm0, %v180_v8 }
  0xb7   : > { %372 = shalt.err (!%p369_p4)
}
  0xb8   : > { %s373_s25 = scalar_lea.hbm %s567_s16, 128  ;;  %s377_s29 = scalar_lea.hbm %s613_s2, 256 }
  0xb9   : > { %p374_p5 = scmp.ne.s32.totalorder %s567_s16, %s373_s25  ;;  %p378_p0 = scmp.lt.u32.totalorder %s567_s16, %s613_s2 }
  0xba   : > { %p379_p1 = scmp.lt.u32.totalorder %s377_s29, %s373_s25  ;;  %p381_p6 = scmp.lt.u32.totalorder %s373_s25, %s567_s16 }
  0xbb   : > { %p375_p8 = pnand %p374_p5, %p622_p11 }
  0xbc   : > { %p380_p3 = por %p379_p1, %p378_p0 }
  0xbd   : > { %p376_p9 = pneg %p375_p8 }
  0xbe   : > { %p382_p12 = por %p381_p6, %p380_p3 }
  0xc0   : > { %p383_p13 = pnand %p382_p12, %p376_p9 }
  0xc2   : > { %386 = shalt.err (!%p383_p13)
}
  0xc3   : > { %282 = dma.vmem_to_hbm [thread:$0]  (%p622_p11), %s569_s7, 128, %s567_s16, %s184_s17  }
  0xc4 PF: > { %s209_s3 = sand.u32 1, %s413_s9   ;;  %p623_p7 = scmp.ne.s32.totalorder %s618_s22, 0 }
  0xc5   : > { %p624_p10 = scmp.ge.s32.totalorder %s425_s12, 2  ;;  %s210_s4 = scalar_lea.sflag [#allocation4], %s209_s3 }
  0xc7   : > { %p289_p2 = pnand %p624_p10, %p623_p7 }
  0xc9   : > { %408 = dma.done.wait (!%p289_p2), %s210_s4, 128  }
  0xca   : > { %410 = vsyncadd (!%p289_p2), %s210_s4, 4294967168  ;;  %p15_p4 = scmp.ge.s32.totalorder %s472_s15, 4   ;;  %s625_s9 = smov %s417_s10 }
  0xcb   : > { %s626_s10 = smov %s421_s11  ;;  %s627_s11 = smov %s484_s18 }
  0xcc   : > { %s628_s12 = smov %s472_s15  ;;  %17 = sbr.rel (!%p15_p4) target bundleno = 5 (0x5), region = 73 }
  0xd3   :  { %215 = vsyncpa [#allocation3], 1 }
  0xd4   :  { %217 = vsyncpa [#allocation3 + $0x1], 1 }
  0xd5   :  { %218 = vsyncpa [#allocation4], 1 }
  0xd6   :  { %220 = vsyncpa [#allocation4 + $0x1], 1 }

</bundles_post_ra>
